<compile_context>
chip_gen: v7x
topology: tpu7x:2x2x1
jax: 0.10.0
libtpu: 0.0.40
codegen_flags: <defaults>
</compile_context>

<pallas_src>
import jax
import jax.numpy as jnp
from jax.experimental import pallas as pl
from jax.experimental.pallas import tpu as pltpu


def ranknet_kernel(x1_ref, x2_ref, w1_ref, b1_ref, w2_ref, b2_ref, w3_ref,
                   o_ref):
    """Fused sigmoid(score(x1) - score(x2)) for one batch tile."""

    def hidden(x):
        # Layer 1: Linear + (Dropout = identity) + ReLU.  f32 accumulate.
        h = jnp.dot(x.astype(w1_ref.dtype), w1_ref[...],
                    preferred_element_type=jnp.float32)
        h = jnp.maximum(h + b1_ref[...], 0.0)
        # Layer 2: Linear + (Dropout = identity) + ReLU.
        h = jnp.dot(h.astype(w2_ref.dtype), w2_ref[...],
                    preferred_element_type=jnp.float32)
        return jnp.maximum(h + b2_ref[...], 0.0)          # (tm, H2)

    # Two small dots per layer against resident weights (no staging copy).
    d = hidden(x1_ref[...]) - hidden(x2_ref[...])          # (tm, H2)

    # Final Linear(H2, 1): bias b3 cancels in s1 - s2.  Contract last dims of
    # (1, H2) x (tm, H2) -> lane-dense (1, tm) row of score differences.
    diff = jax.lax.dot_general(
        w3_ref[...], d,
        dimension_numbers=(((1,), (1,)), ((), ())),
        preferred_element_type=jnp.float32)                # (1, tm)

    # Overflow-safe sigmoid: exp only of non-positive arguments (EUP).
    # (pl.reciprocal(..., approx=True) would shave a divide but changes
    #  numerics; kept exact for parity with the torch reference.)
    e = jnp.exp(-jnp.abs(diff))
    s = 1.0 / (1.0 + e)
    o_ref[...] = jnp.where(diff >= 0.0, s, 1.0 - s)


def _choose_batch_tile(batch, block_b):
    """Pick (tm, pad) for the batch grid.

    Priorities:
      * avoid jnp.pad (an extra full HBM read+write of both inputs in XLA),
      * keep the (1, tm) output block a multiple of 128 lanes or equal to the
        full (padded) batch,
      * large tiles to amortize the ~0.35us per-grid-step overhead,
      * >= 2 grid steps when the batch is big enough (v7x megacore).
    """
    cap = max(128, (block_b // 128) * 128)
    if batch < 256:
        # Single full-array tile: block == full dims, no pad, no (8,128) issue.
        return batch, 0
    # Largest multiple of 128 that divides the batch, capped by block_b and by
    # batch//2 so at least two grid steps exist.
    upper = min(cap, (batch // 2 // 128) * 128)
    for tm in range(upper, 0, -128):
        if batch % tm == 0:
            return tm, 0
    # No dividing tile: fall back to padding up to a 128-aligned tile that
    # still leaves >= 2 grid steps.
    bp128 = pl.cdiv(batch, 128) * 128
    tm = min(cap, max(128, (bp128 // 2 // 128) * 128))
    return tm, (-batch) % tm


def ranknet_forward(x1, x2, params, *, block_b=1024, mxu_dtype=None):
    """Wrapper: batch-gridded, lane-dense-output fused RankNet forward."""
    w1, b1, w2, b2, w3, b3 = params   # b3 is unused: it cancels in s1 - s2
    del b3
    B, F = x1.shape
    H1 = w1.shape[1]
    H2 = w2.shape[1]

    # Pre-transpose w3 (H2, 1) -> (1, H2) once, in the wrapper.
    w3_row = w3.reshape(1, H2).astype(jnp.float32)

    # Optional reduced-precision MXU weights (v5e/v6e).  Activations are NOT
    # cast here (wrapper-side casts add a whole extra HBM pass on the dominant
    # traffic); the kernel casts them right before each dot.
    if mxu_dtype is not None:
        w1 = w1.astype(mxu_dtype)
        w2 = w2.astype(mxu_dtype)

    tm, pad = _choose_batch_tile(B, block_b)
    if pad:
        x1 = jnp.pad(x1, ((0, pad), (0, 0)))
        x2 = jnp.pad(x2, ((0, pad), (0, 0)))
    bp = B + pad
    steps = bp // tm

    # Triple-buffer the activation streams only when the grid is deep enough
    # for it to matter; per-step compute is short so this hides DMA latency.
    act_kwargs = {}
    if steps >= 3:
        act_kwargs["pipeline_mode"] = pl.Buffered(3)

    out_row = pl.pallas_call(
        ranknet_kernel,
        out_shape=jax.ShapeDtypeStruct((1, bp), jnp.float32),
        grid=(steps,),
        in_specs=[
            pl.BlockSpec((tm, F), lambda i: (i, 0), **act_kwargs),  # x1 tile
            pl.BlockSpec((tm, F), lambda i: (i, 0), **act_kwargs),  # x2 tile
            pl.BlockSpec((F, H1), lambda i: (0, 0)),     # w1 (VMEM-resident)
            pl.BlockSpec((1, H1), lambda i: (0, 0)),     # b1
            pl.BlockSpec((H1, H2), lambda i: (0, 0)),    # w2 (VMEM-resident)
            pl.BlockSpec((1, H2), lambda i: (0, 0)),     # b2
            pl.BlockSpec((1, H2), lambda i: (0, 0)),     # w3 row (resident)
        ],
        out_specs=pl.BlockSpec((1, tm), lambda i: (0, i)),   # lane-dense out
        compiler_params=pltpu.CompilerParams(
            dimension_semantics=("parallel",)),
    )(x1, x2, w1, b1, w2, b2, w3_row)

    return out_row[0, :B].reshape(B, 1)


def init_ranknet_params(key, n_feature, h1_units, h2_units):
    """Deterministic init mimicking torch.nn.Linear default U[-1/sqrt(fan_in), +]."""
    def linear_init(k, fan_in, fan_out):
        kw, kb = jax.random.split(k)
        bound = 1.0 / jnp.sqrt(jnp.float32(fan_in))
        w = jax.random.uniform(kw, (fan_in, fan_out), jnp.float32, -bound, bound)
        b = jax.random.uniform(kb, (1, fan_out), jnp.float32, -bound, bound)
        return w, b

    k1, k2, k3 = jax.random.split(key, 3)
    w1, b1 = linear_init(k1, n_feature, h1_units)
    w2, b2 = linear_init(k2, h1_units, h2_units)
    w3, b3 = linear_init(k3, h2_units, 1)
    return (w1, b1, w2, b2, w3, b3)


if __name__ == "__main__":
    key = jax.random.PRNGKey(0)
    k_params, k_x1, k_x2 = jax.random.split(key, 3)

    # Small shapes consistent with the module's forward.
    B = 8            # batch (number of query-doc pairs)
    n_feature = 32
    h1_units = 32
    h2_units = 16

    params = init_ranknet_params(k_params, n_feature, h1_units, h2_units)
    x1 = jax.random.normal(k_x1, (B, n_feature), jnp.float32)
    x2 = jax.random.normal(k_x2, (B, n_feature), jnp.float32)

    out = jax.block_until_ready(ranknet_forward(x1, x2, params))

    # Pure-JAX reference (same math, eval-mode dropout = identity).
    w1, b1, w2, b2, w3, b3 = params

    def ref_score(x):
        h = jnp.maximum(x @ w1 + b1, 0.0)
        h = jnp.maximum(h @ w2 + b2, 0.0)
        return h @ w3 + b3

    ref = jax.nn.sigmoid(ref_score(x1) - ref_score(x2))

    assert out.shape == (B, 1)
    assert jnp.allclose(out, ref, atol=1e-5, rtol=1e-5)
    print("KERNEL_OK")
</pallas_src>

<mosaic_0001>
module attributes {stable_mosaic.version = 11 : i64} {
  func.func @ranknet_kernel(%arg0: i32, %arg1: memref<8x32xf32, #tpu.memory_space<vmem>>, %arg2: memref<8x32xf32, #tpu.memory_space<vmem>>, %arg3: memref<32x32xf32, #tpu.memory_space<vmem>>, %arg4: memref<1x32xf32, #tpu.memory_space<vmem>>, %arg5: memref<32x16xf32, #tpu.memory_space<vmem>>, %arg6: memref<1x16xf32, #tpu.memory_space<vmem>>, %arg7: memref<1x16xf32, #tpu.memory_space<vmem>>, %arg8: memref<1x8xf32, #tpu.memory_space<vmem>>) attributes {dimension_semantics = [#tpu.dimension_semantics<parallel>], iteration_bounds = array<i64: 1>, scalar_prefetch = 0 : i64, scratch_operands = 0 : i64, tpu.core_type = #tpu.core_type<tc>, window_params = [{transform_indices = @transform_0, window_bounds = array<i64: 8, 32>}, {transform_indices = @transform_1, window_bounds = array<i64: 8, 32>}, {pipeline_mode = #tpu.pipeline_mode<synchronous>, transform_indices = @transform_2, window_bounds = array<i64: 32, 32>}, {pipeline_mode = #tpu.pipeline_mode<synchronous>, transform_indices = @transform_3, window_bounds = array<i64: 1, 32>}, {pipeline_mode = #tpu.pipeline_mode<synchronous>, transform_indices = @transform_4, window_bounds = array<i64: 32, 16>}, {pipeline_mode = #tpu.pipeline_mode<synchronous>, transform_indices = @transform_5, window_bounds = array<i64: 1, 16>}, {pipeline_mode = #tpu.pipeline_mode<synchronous>, transform_indices = @transform_6, window_bounds = array<i64: 1, 16>}, {transform_indices = @transform_7, window_bounds = array<i64: 1, 8>}]} {
    %c0 = arith.constant 0 : index
    %c0_0 = arith.constant 0 : index
    %0 = vector.load %arg1[%c0, %c0_0] : memref<8x32xf32, #tpu.memory_space<vmem>>, vector<8x32xf32>
    %c0_1 = arith.constant 0 : index
    %c0_2 = arith.constant 0 : index
    %1 = vector.load %arg3[%c0_1, %c0_2] : memref<32x32xf32, #tpu.memory_space<vmem>>, vector<32x32xf32>
    %cst = arith.constant dense<0.000000e+00> : vector<8x32xf32>
    %2 = tpu.matmul %0, %1, %cst {dimension_numbers = #tpu.dot_dimension_numbers<[1], [0], [0], [1], [0, 0, 1, 1], [], []>} : vector<8x32xf32>, vector<32x32xf32>, vector<8x32xf32> -> vector<8x32xf32>
    %c0_3 = arith.constant 0 : index
    %c0_4 = arith.constant 0 : index
    %3 = vector.load %arg4[%c0_3, %c0_4] : memref<1x32xf32, #tpu.memory_space<vmem>>, vector<1x32xf32>
    %4 = vector.broadcast %3 : vector<1x32xf32> to vector<8x32xf32>
    %5 = arith.addf %2, %4 : vector<8x32xf32>
    %cst_5 = arith.constant 0.000000e+00 : f32
    %6 = vector.broadcast %cst_5 : f32 to vector<8x32xf32>
    %7 = arith.maximumf %5, %6 : vector<8x32xf32>
    %c0_6 = arith.constant 0 : index
    %c0_7 = arith.constant 0 : index
    %8 = vector.load %arg5[%c0_6, %c0_7] : memref<32x16xf32, #tpu.memory_space<vmem>>, vector<32x16xf32>
    %cst_8 = arith.constant dense<0.000000e+00> : vector<8x16xf32>
    %9 = tpu.matmul %7, %8, %cst_8 {dimension_numbers = #tpu.dot_dimension_numbers<[1], [0], [0], [1], [0, 0, 1, 1], [], []>} : vector<8x32xf32>, vector<32x16xf32>, vector<8x16xf32> -> vector<8x16xf32>
    %c0_9 = arith.constant 0 : index
    %c0_10 = arith.constant 0 : index
    %10 = vector.load %arg6[%c0_9, %c0_10] : memref<1x16xf32, #tpu.memory_space<vmem>>, vector<1x16xf32>
    %11 = vector.broadcast %10 : vector<1x16xf32> to vector<8x16xf32>
    %12 = arith.addf %9, %11 : vector<8x16xf32>
    %cst_11 = arith.constant 0.000000e+00 : f32
    %13 = vector.broadcast %cst_11 : f32 to vector<8x16xf32>
    %14 = arith.maximumf %12, %13 : vector<8x16xf32>
    %c0_12 = arith.constant 0 : index
    %c0_13 = arith.constant 0 : index
    %15 = vector.load %arg2[%c0_12, %c0_13] : memref<8x32xf32, #tpu.memory_space<vmem>>, vector<8x32xf32>
    %c0_14 = arith.constant 0 : index
    %c0_15 = arith.constant 0 : index
    %16 = vector.load %arg3[%c0_14, %c0_15] : memref<32x32xf32, #tpu.memory_space<vmem>>, vector<32x32xf32>
    %cst_16 = arith.constant dense<0.000000e+00> : vector<8x32xf32>
    %17 = tpu.matmul %15, %16, %cst_16 {dimension_numbers = #tpu.dot_dimension_numbers<[1], [0], [0], [1], [0, 0, 1, 1], [], []>} : vector<8x32xf32>, vector<32x32xf32>, vector<8x32xf32> -> vector<8x32xf32>
    %c0_17 = arith.constant 0 : index
    %c0_18 = arith.constant 0 : index
    %18 = vector.load %arg4[%c0_17, %c0_18] : memref<1x32xf32, #tpu.memory_space<vmem>>, vector<1x32xf32>
    %19 = vector.broadcast %18 : vector<1x32xf32> to vector<8x32xf32>
    %20 = arith.addf %17, %19 : vector<8x32xf32>
    %cst_19 = arith.constant 0.000000e+00 : f32
    %21 = vector.broadcast %cst_19 : f32 to vector<8x32xf32>
    %22 = arith.maximumf %20, %21 : vector<8x32xf32>
    %c0_20 = arith.constant 0 : index
    %c0_21 = arith.constant 0 : index
    %23 = vector.load %arg5[%c0_20, %c0_21] : memref<32x16xf32, #tpu.memory_space<vmem>>, vector<32x16xf32>
    %cst_22 = arith.constant dense<0.000000e+00> : vector<8x16xf32>
    %24 = tpu.matmul %22, %23, %cst_22 {dimension_numbers = #tpu.dot_dimension_numbers<[1], [0], [0], [1], [0, 0, 1, 1], [], []>} : vector<8x32xf32>, vector<32x16xf32>, vector<8x16xf32> -> vector<8x16xf32>
    %c0_23 = arith.constant 0 : index
    %c0_24 = arith.constant 0 : index
    %25 = vector.load %arg6[%c0_23, %c0_24] : memref<1x16xf32, #tpu.memory_space<vmem>>, vector<1x16xf32>
    %26 = vector.broadcast %25 : vector<1x16xf32> to vector<8x16xf32>
    %27 = arith.addf %24, %26 : vector<8x16xf32>
    %cst_25 = arith.constant 0.000000e+00 : f32
    %28 = vector.broadcast %cst_25 : f32 to vector<8x16xf32>
    %29 = arith.maximumf %27, %28 : vector<8x16xf32>
    %30 = arith.subf %14, %29 : vector<8x16xf32>
    %c0_26 = arith.constant 0 : index
    %c0_27 = arith.constant 0 : index
    %31 = vector.load %arg7[%c0_26, %c0_27] : memref<1x16xf32, #tpu.memory_space<vmem>>, vector<1x16xf32>
    %cst_28 = arith.constant dense<0.000000e+00> : vector<1x8xf32>
    %32 = tpu.matmul %31, %30, %cst_28 {dimension_numbers = #tpu.dot_dimension_numbers<[1], [1], [0], [0], [0, 0, 1, 0], [], []>} : vector<1x16xf32>, vector<8x16xf32>, vector<1x8xf32> -> vector<1x8xf32>
    %33 = math.absf %32 : vector<1x8xf32>
    %cst_29 = arith.constant 0.000000e+00 : f32
    %34 = vector.broadcast %cst_29 : f32 to vector<1x8xf32>
    %35 = arith.subf %34, %33 : vector<1x8xf32>
    %36 = math.exp %35 : vector<1x8xf32>
    %cst_30 = arith.constant 1.000000e+00 : f32
    %37 = vector.broadcast %cst_30 : f32 to vector<1x8xf32>
    %38 = arith.addf %37, %36 : vector<1x8xf32>
    %cst_31 = arith.constant 1.000000e+00 : f32
    %39 = vector.broadcast %cst_31 : f32 to vector<1x8xf32>
    %40 = arith.divf %39, %38 : vector<1x8xf32>
    %cst_32 = arith.constant 0.000000e+00 : f32
    %41 = vector.broadcast %cst_32 : f32 to vector<1x8xf32>
    %42 = arith.cmpf oge, %32, %41 : vector<1x8xf32>
    %cst_33 = arith.constant 1.000000e+00 : f32
    %43 = vector.broadcast %cst_33 : f32 to vector<1x8xf32>
    %44 = arith.subf %43, %40 : vector<1x8xf32>
    %45 = arith.select %42, %40, %44 : vector<1x8xi1>, vector<1x8xf32>
    %c0_34 = arith.constant 0 : index
    %c0_35 = arith.constant 0 : index
    %46 = vector.load %arg8[%c0_34, %c0_35] : memref<1x8xf32, #tpu.memory_space<vmem>>, vector<1x8xf32>
    tpu.vector_store %arg8[%c0_34, %c0_35], %45 {strides = array<i32>} : memref<1x8xf32, #tpu.memory_space<vmem>>, vector<1x8xf32>,
    return
  }
  func.func @transform_0(%arg0: i32) -> (i32, i32) {
    %c0_i32 = arith.constant 0 : i32
    %c0_i32_0 = arith.constant 0 : i32
    return %arg0, %c0_i32 : i32, i32
  }
  func.func @transform_1(%arg0: i32) -> (i32, i32) {
    %c0_i32 = arith.constant 0 : i32
    %c0_i32_0 = arith.constant 0 : i32
    return %arg0, %c0_i32 : i32, i32
  }
  func.func @transform_2(%arg0: i32) -> (i32, i32) {
    %c0_i32 = arith.constant 0 : i32
    %c0_i32_0 = arith.constant 0 : i32
    %c0_i32_1 = arith.constant 0 : i32
    return %c0_i32, %c0_i32_0 : i32, i32
  }
  func.func @transform_3(%arg0: i32) -> (i32, i32) {
    %c0_i32 = arith.constant 0 : i32
    %c0_i32_0 = arith.constant 0 : i32
    %c0_i32_1 = arith.constant 0 : i32
    return %c0_i32, %c0_i32_0 : i32, i32
  }
  func.func @transform_4(%arg0: i32) -> (i32, i32) {
    %c0_i32 = arith.constant 0 : i32
    %c0_i32_0 = arith.constant 0 : i32
    %c0_i32_1 = arith.constant 0 : i32
    return %c0_i32, %c0_i32_0 : i32, i32
  }
  func.func @transform_5(%arg0: i32) -> (i32, i32) {
    %c0_i32 = arith.constant 0 : i32
    %c0_i32_0 = arith.constant 0 : i32
    %c0_i32_1 = arith.constant 0 : i32
    return %c0_i32, %c0_i32_0 : i32, i32
  }
  func.func @transform_6(%arg0: i32) -> (i32, i32) {
    %c0_i32 = arith.constant 0 : i32
    %c0_i32_0 = arith.constant 0 : i32
    %c0_i32_1 = arith.constant 0 : i32
    return %c0_i32, %c0_i32_0 : i32, i32
  }
  func.func @transform_7(%arg0: i32) -> (i32, i32) {
    %c0_i32 = arith.constant 0 : i32
    %c0_i32_0 = arith.constant 0 : i32
    return %c0_i32, %arg0 : i32, i32
  }
}

</mosaic_0001>

<bundles_post_ra>
// kernel: tpu_custom_call.1
= control target key start
LH: loop header
LB: loop body
LE: loop exit
PB: predicated region body
PF: predicated region fallthrough
CT: control target
= control target key end

     0   :  { %v588_v3 = vmov 0.0|0.0   ;;  %vm589_vm0 = vmmov 0   ;;  %v590_v6 = vmov 0.0   ;;  %s692_s0 = inlined_call_operand.vmem [shape: f32[8,32], index: 0, kind: input, shape index: {}]   ;;  %s693_s1 = inlined_call_operand.vmem [shape: f32[8,32], index: 1, kind: input, shape index: {}]   ;;  %s694_s2 = inlined_call_operand.vmem [shape: f32[32,32], index: 2, kind: input, shape index: {}]   ;;  %s695_s3 = inlined_call_operand.vmem [shape: f32[1,32], index: 3, kind: input, shape index: {}]   ;;  %s696_s4 = inlined_call_operand.vmem [shape: f32[32,16], index: 4, kind: input, shape index: {}]   ;;  %s697_s5 = inlined_call_operand.vmem [shape: f32[1,16], index: 5, kind: input, shape index: {}]   ;;  %s698_s6 = inlined_call_operand.vmem [shape: f32[1,16], index: 6, kind: input, shape index: {}]   ;;  %s699_s7 = inlined_call_operand.hbm [shape: f32[1,8], index: 7, kind: output, shape index: {}]  }
   0x1   :  { %v28_v0 = vld [vmem:[%s694_s2] sm:$0xff]  ;;  %v29_v1 = vld [vmem:[%s694_s2 + $0x8] sm:$0xff]  ;;  %v30_v2 = vld [vmem:[%s694_s2 + $0x10] sm:$0xff]  ;;  %532 = vmatprep.subr.bf16.mxu0 %v588_v3  ;;  %491 = vmatprep.mubr.msk.f32.mxu0 %vm589_vm0, %v590_v6 }
   0x2   :  { %v533_v4 = vpack.c.bf16 %v29_v1, %v28_v0  ;;  %v31_v5 = vld [vmem:[%s694_s2 + $0x18] sm:$0xff]  ;;  %538 = vmatprep.subr.bf16.mxu1 %v588_v3  ;;  %v114_v7 = vld [vmem:[%s696_s4] sm:$0xff]  ;;  %v115_v8 = vld [vmem:[%s696_s4 + $0x8] sm:$0xff]  ;;  %502 = vmatprep.mubr.msk.f32.mxu1 %vm589_vm0, %v590_v6 }
   0x3   :  { %v536_v9 = vpack.c.bf16 %v31_v5, %v30_v2  ;;  %v539_v10 = vpack.c.bf16 %v115_v8, %v114_v7 }
   0x4   :  { %534 = vmatpush3.bf16.msra.mxu0 %v533_v4 }
   0x5   :  { %12 = vsyncpa [#allocation3], 0  ;;  %535 = vmatprep.subr.bf16.mxu0 %v588_v3  ;;  %540 = vmatpush3.bf16.msra.mxu1 %v539_v10  ;;  %v27_v11 = vld [vmem:[%s692_s0] sm:$0xff]  ;;  %vm39_vm1 = vcmask 261120   ;;  %v116_v13 = vld [vmem:[%s696_s4 + $0x10] sm:$0xff]  ;;  %vm350_vm2 = vcmask 130048  }
   0x6   :  { %541 = vmatprep.subr.bf16.mxu1 %v588_v3  ;;  %v199_v12 = vld [vmem:[%s693_s1] sm:$0xff]  ;;  %v117_v14 = vld [vmem:[%s696_s4 + $0x18] sm:$0xff]  ;;  %vm437_vm3 = vcmask 57344  }
   0x7   :  { %v542_v15 = vpack.c.bf16 %v117_v14, %v116_v13  ;;  %v453_v16 = vld [vmem:[%s695_s3] ss:$0 sm:$0xff] }
   0x8   :  { %537 = vmatpush3.bf16.msra.mxu0 %v536_v9  ;;  %v455_v27 = vld [vmem:[%s697_s5] ss:$0 sm:$0xff]  ;;  %s591_s5 = smov [#allocation2]  }
   0x9   :  { %544 = vmatprep.subr.bf16.mxu0 %v588_v3  ;;  %543 = vmatpush3.bf16.msra.mxu1 %v542_v15  ;;  %v349_v35 = vld [vmem:[%s698_s6] sm:$0x1]  ;;  %s445_s22 = sshll.u32 %s591_s5, 4  ;;  %s446_s22 = int_to_ptr.vmem [resolvable:$true] %s445_s22 }
   0xa   :  { %550 = vmatprep.subr.bf16.mxu1 %v588_v3  ;;  %s564_s6 = scalar_lea.vmem %s446_s22, 16  ;;  %s568_s23 = scalar_lea.vmem %s446_s22, 32 }
   0xb   :  { %492 = vmatmul.mubr.msk.f32.vlgmr.msra.gmra.mrb[0].mxu0 %vm39_vm1, %v27_v11  ;;  %p565_p0 = scmp.ne.s32.totalorder %s446_s22, %s564_s6  ;;  %p569_p1 = scmp.lt.s32.totalorder %s446_s22, %s446_s22 }
   0xc   :  { %546 = vmatpush3.bf16.msra.mxu0 %v533_v4  ;;  %513 = vmatprep.mubr.msk.f32.mxu0 %vm589_vm0, %v590_v6  ;;  %p570_p2 = scmp.lt.s32.totalorder %s568_s23, %s564_s6 }
   0xd   :  { %547 = vmatprep.subr.bf16.mxu0 %v588_v3 }
   0xe   :  { %p571_p3 = por %p570_p2, %p569_p1 }
  0x10   :  { %549 = vmatpush3.bf16.msra.mxu0 %v536_v9  ;;  %p572_p4 = pnand %p571_p3, %p565_p0 }
  0x11   :  { %527 = vmatprep.subr.mxu0 %v590_v6 }
  0x13   :  { %514 = vmatmul.mubr.msk.f32.vlgmr.msra.gmra.mrb[2].mxu0 %vm39_vm1, %v199_v12 }
  0x14   :  { %529 = vmatprep.mubr.msk.f32.mxu0 %vm589_vm0, %v590_v6 }
  0xde   :  { %v109_v17 = vpop.f32.mrb[0].mxu0 }
  0xdf   :  { %v110_v18 = vadd.f32 %v453_v16, %v109_v17  ;;  %v493_v19 = vpop.f32.mrb[1].mxu0 }
  0xe1   :  { %v113_v20 = vmax.f32 %v110_v18, 0.0 }
  0xe3   :  { %503 = vmatmul.mubr.msk.f32.vlgmr.msra.gmra.mrb[0].mxu1 %vm39_vm1, %v113_v20 }
  0xe4   :  { %552 = vmatpush3.bf16.msra.mxu1 %v539_v10  ;;  %524 = vmatprep.mubr.msk.f32.mxu1 %vm589_vm0, %v590_v6 }
  0xe5   :  { %553 = vmatprep.subr.bf16.mxu1 %v588_v3 }
  0xe6   :  { %v269_v21 = vpop.f32.mrb[2].mxu0 }
  0xe7   :  { %v270_v22 = vadd.f32 %v453_v16, %v269_v21  ;;  %v515_v23 = vpop.f32.mrb[3].mxu0 }
  0xe8   :  { %555 = vmatpush3.bf16.msra.mxu1 %v542_v15 }
  0xe9   :  { %v273_v24 = vmax.f32 %v270_v22, 0.0 }
  0xeb   :  { %525 = vmatmul.mubr.msk.f32.vlgmr.msra.gmra.mrb[2].mxu1 %vm39_vm1, %v273_v24 }
 0x1b6   :  { %v194_v25 = vpop.f32.mrb[0].mxu1 }
 0x1b7   :  { %v504_v26 = vpop.f32.mrb[1].mxu1  ;;  %v195_v28 = vadd.f32 %v455_v27, %v194_v25 }
 0x1b9   :  { %v198_v32 = vmax.f32 %v195_v28, 0.0 }
 0x1be   :  { %v343_v29 = vpop.f32.mrb[2].mxu1 }
 0x1bf   :  { %v344_v30 = vadd.f32 %v455_v27, %v343_v29  ;;  %v526_v31 = vpop.f32.mrb[3].mxu1 }
 0x1c1   :  { %v347_v33 = vmax.f32 %v344_v30, 0.0 }
 0x1c3   :  { %v348_v34 = vsub.f32 %v198_v32, %v347_v33 }
 0x1c5   :  { %528 = vmatpush3.xpose.msk.msra.mxu0 %vm350_vm2, %v348_v34 }
 0x1c8   :  { %530 = vmatmul.mubr.msk.f32.vlgmr.msra.gmra.mrb[4].mxu0 %vm350_vm2, %v349_v35 }
 0x29b   :  { %v423_v36 = vpop.f32.mrb[4].mxu0 }
 0x29c   :  { %v427_v37 = vand.u32 2147483647, %v423_v36  ;;  %v531_v38 = vpop.f32.mrb[5].mxu0  ;;  %vm434_vm4 = vcmp.ge.f32.partialorder %v423_v36, 0.0 }
 0x29e   :  { %v428_v39 = vsub.f32 0.0, %v427_v37 }
 0x2a0   :  { %v429_v40 = vmul.f32 1.442695, %v428_v39 }
 0x2a2   :  { %560 = vpow2.f32 %v429_v40 }
 0x2ac   :  { %v561_v41 = vpop.eup %560 }
 0x2ad   :  { %v431_v42 = vadd.f32 1.0, %v561_v41 }
 0x2af   :  { %562 = vrcp.f32 %v431_v42 }
 0x2b9   :  { %v563_v43 = vpop.eup %562 }
 0x2ba   :  { %v435_v44 = vsub.f32 1.0, %v563_v43 }
 0x2bc   :  { %v436_v45 = vsel %vm434_vm4, %v563_v43, %v435_v44 }
 0x2bd   :  { %438 = vst.msk [vmem:[#allocation2] sm:$0x1] %vm437_vm3, %v436_v45 }
 0x2be   :  { %575 = shalt.err (!%p572_p4)
}
 0x2bf   :  { %s576_s26 = scalar_lea.hbm %s699_s7, 16 }
 0x2c0   :  { %p577_p5 = scmp.ne.s32.totalorder %s699_s7, %s576_s26  ;;  %p580_p6 = scmp.lt.u32.totalorder %s576_s26, %s699_s7 }
 0x2c2   :  { %p582_p7 = pnand %p580_p6, %p577_p5 }
 0x2c4   :  { %585 = shalt.err (!%p582_p7)
}
 0x2c5   :  { %448 = dma.vmem_to_hbm [thread:$0]  %s446_s22, 16, %s699_s7, [#allocation3]  }
 0x2c6   :  { %586 = dma.done.wait [#allocation3], 16  }
 0x2c7   :  { %587 = vsyncadd [#allocation3], 4294967280 }
 0x2c8   :  { %452 = vsyncpa [#allocation3], 1 }

</bundles_post_ra>
